<compile_context>
chip_gen: v7x
topology: tpu7x:2x2x1
jax: 0.10.0
libtpu: 0.0.40
codegen_flags: <defaults>
</compile_context>

<pallas_src>
import functools

import jax
import jax.numpy as jnp
from jax import lax
from jax.experimental import pallas as pl
from jax.experimental.pallas import tpu as pltpu


def _round_up(x, m):
    return ((x + m - 1) // m) * m


# ---------------------------------------------------------------------------
# Focal loss kernel (_sigmoid + _neg_loss)
# ---------------------------------------------------------------------------
def _focal_kernel(pred_ref, gt_ref, loss_out_ref, npos_out_ref, *,
                  total, block_rows):
    i = pl.program_id(0)

    x = pred_ref[...].astype(jnp.float32)                  # (block_rows, 128)
    p = jnp.clip(jax.nn.sigmoid(x), 1e-4, 1.0 - 1e-4)      # _sigmoid
    gt = gt_ref[...].astype(jnp.float32)

    # validity mask rebuilt in-kernel (no extra HBM stream)
    row = lax.broadcasted_iota(jnp.int32, (block_rows, 128), 0)
    lane = lax.broadcasted_iota(jnp.int32, (block_rows, 128), 1)
    gidx = (i * block_rows + row) * 128 + lane
    valid = (gidx < total).astype(jnp.float32)

    pos_inds = jnp.where(gt == 1.0, 1.0, 0.0) * valid
    neg_inds = jnp.where(gt < 1.0, 1.0, 0.0) * valid
    neg_weights = (1.0 - gt) ** 4

    pos_loss = jnp.log(p) * (1.0 - p) ** 2 * pos_inds
    neg_loss = jnp.log(1.0 - p) * (p * p) * neg_weights * neg_inds
    contrib = pos_loss + neg_loss                           # (block_rows, 128)

    # Reduce the block to a lane-dense (8, 128) partial (VALU-only sublane-group
    # adds); the cheap cross-lane reduction happens once, in JAX.
    n_sub = block_rows // 8
    loss_out_ref[...] = jnp.sum(contrib.reshape(n_sub, 8, 128), axis=0)
    npos_out_ref[...] = jnp.sum(pos_inds.reshape(n_sub, 8, 128), axis=0)


def focal_loss(pred_logits, gt):
    """pred_logits, gt: (B, C, H, W) f32 -> scalar f32 (CenterNet focal/neg loss)."""
    LANES = 128
    total = int(pred_logits.size)
    rows = -(-total // LANES)
    block_rows = min(1024, _round_up(rows, 8))
    n_blocks = -(-rows // block_rows)
    rows_padded = n_blocks * block_rows
    padded = rows_padded * LANES

    def flat_pad(a):
        a = a.reshape(-1).astype(jnp.float32)
        return jnp.pad(a, (0, padded - total)).reshape(rows_padded, LANES)

    p = flat_pad(pred_logits)
    g = flat_pad(gt)

    kernel = functools.partial(_focal_kernel, total=total, block_rows=block_rows)
    in_spec = pl.BlockSpec((block_rows, LANES), lambda i: (i, 0))

    loss_p, npos_p = pl.pallas_call(
        kernel,
        out_shape=(jax.ShapeDtypeStruct((n_blocks * 8, LANES), jnp.float32),
                   jax.ShapeDtypeStruct((n_blocks * 8, LANES), jnp.float32)),
        grid_spec=pltpu.PrefetchScalarGridSpec(
            num_scalar_prefetch=0,
            grid=(n_blocks,),
            in_specs=[in_spec, in_spec],
            out_specs=[pl.BlockSpec((8, LANES), lambda i: (i, 0)),
                       pl.BlockSpec((8, LANES), lambda i: (i, 0))],
        ),
        compiler_params=pltpu.CompilerParams(
            dimension_semantics=("parallel",)),
    )(p, g)

    loss_sum = jnp.sum(loss_p)
    num_pos = jnp.sum(npos_p)
    # pos_loss is identically 0 when num_pos == 0, so dividing by max(num_pos, 1)
    # reproduces both branches of the reference (and avoids the inf/nan branch).
    return -loss_sum / jnp.maximum(num_pos, 1.0)


# ---------------------------------------------------------------------------
# Fused RegL1 loss kernel (all regression heads in one pallas_call)
# ---------------------------------------------------------------------------
def _fused_regl1_kernel(feat_ref, ind_ref, mask_ref, tgt_ref, *refs,
                        n_heads, bounds, relu_flags, c_counts):
    out_refs = refs[:n_heads]
    acc_refs = refs[n_heads:2 * n_heads]
    msum_ref = refs[2 * n_heads]

    b = pl.program_id(0)

    @pl.when(b == 0)
    def _():
        for r in acc_refs:
            r[...] = jnp.zeros_like(r)
        msum_ref[...] = jnp.zeros_like(msum_ref)

    feat = feat_ref[0].astype(jnp.float32)          # (CP, HWP) -- HW on lanes
    cp, hwp = feat.shape
    tgt = tgt_ref[0].astype(jnp.float32)            # (CP, KP)
    kp = tgt.shape[1]
    m = mask_ref[0].astype(jnp.float32)             # (1, KP)   (zero on K padding)
    ind = ind_ref[0]                                # (1, KP)   int32

    # _relu: clamp(relu(x), 0, 179.99) applied only to channels of relu heads
    chan_col = lax.broadcasted_iota(jnp.int32, (cp, 1), 0)
    relu_sel = None
    for h in range(n_heads):
        if relu_flags[h]:
            s, e = bounds[h]
            sel_h = (chan_col >= s) & (chan_col < e)
            relu_sel = sel_h if relu_sel is None else (relu_sel | sel_h)
    if relu_sel is not None:
        feat = jnp.where(relu_sel, jnp.clip(feat, 0.0, 179.99), feat)

    # gather-as-matmul: feat(C, HW) @ onehot(HW, K) -> gathered(C, K)
    hw_iota = lax.broadcasted_iota(jnp.int32, (hwp, kp), 0)
    onehot = (hw_iota == ind).astype(jnp.float32)
    gathered = jnp.dot(feat, onehot, preferred_element_type=jnp.float32)

    # |pred*m - tgt*m| == m * |pred - tgt|
    ad = jnp.abs(gathered - tgt) * m                # (CP, KP)

    chan = lax.broadcasted_iota(jnp.int32, (cp, kp), 0)
    for h in range(n_heads):
        s, e = bounds[h]
        sel = ((chan >= s) & (chan < e)).astype(jnp.float32)
        acc_refs[h][...] += jnp.sum(ad * sel)
    msum_ref[...] += jnp.sum(m)

    @pl.when(b == pl.num_programs(0) - 1)
    def _():
        for h in range(n_heads):
            out_refs[h][...] = acc_refs[h][...] / (
                msum_ref[...] * float(c_counts[h]) + 1e-4)


def fused_reg_l1_losses(preds, targets, relu_flags, mask, ind):
    """preds: list of (B,C_i,H,W); targets: list of (B,K,C_i); mask,(B,K); ind (B,K).
    Returns one scalar loss per head."""
    n_heads = len(preds)
    B, _, H, W = preds[0].shape
    HW = H * W
    K = ind.shape[1]
    HWP = _round_up(HW, 128)
    KP = _round_up(K, 128)
    c_counts = [int(p.shape[1]) for p in preds]
    C = sum(c_counts)
    CP = _round_up(C, 8)

    bounds, s = [], 0
    for c in c_counts:
        bounds.append((s, s + c))
        s += c

    # NCHW -> (B, C, HW) is a pure reshape (no transpose); channels concatenated.
    feat = jnp.concatenate(
        [p.astype(jnp.float32).reshape(B, c, HW) for p, c in zip(preds, c_counts)],
        axis=1)
    feat = jnp.pad(feat, ((0, 0), (0, CP - C), (0, HWP - HW)))

    tgt = jnp.concatenate([t.astype(jnp.float32) for t in targets], axis=2)  # (B,K,C)
    tgt = jnp.transpose(tgt, (0, 2, 1))                                      # (B,C,K)
    tgt = jnp.pad(tgt, ((0, 0), (0, CP - C), (0, KP - K)))

    mask_p = jnp.pad(mask.astype(jnp.float32), ((0, 0), (0, KP - K)))
    mask_p = mask_p.reshape(B, 1, KP)
    ind_p = jnp.pad(ind.astype(jnp.int32), ((0, 0), (0, KP - K)))
    ind_p = ind_p.reshape(B, 1, KP)

    kernel = functools.partial(
        _fused_regl1_kernel, n_heads=n_heads, bounds=tuple(bounds),
        relu_flags=tuple(bool(r) for r in relu_flags), c_counts=tuple(c_counts))

    out_shapes = tuple(jax.ShapeDtypeStruct((1, 1), jnp.float32)
                       for _ in range(n_heads))
    out_specs = tuple(pl.BlockSpec((1, 1), lambda b: (0, 0))
                      for _ in range(n_heads))

    outs = pl.pallas_call(
        kernel,
        out_shape=out_shapes,
        grid_spec=pltpu.PrefetchScalarGridSpec(
            num_scalar_prefetch=0,
            grid=(B,),
            in_specs=[
                pl.BlockSpec((1, CP, HWP), lambda b: (b, 0, 0)),
                pl.BlockSpec((1, 1, KP), lambda b: (b, 0, 0)),
                pl.BlockSpec((1, 1, KP), lambda b: (b, 0, 0)),
                pl.BlockSpec((1, CP, KP), lambda b: (b, 0, 0)),
            ],
            out_specs=out_specs,
            scratch_shapes=[pltpu.VMEM((1, 1), jnp.float32)] * (n_heads + 1),
        ),
        compiler_params=pltpu.CompilerParams(
            dimension_semantics=("arbitrary",)),
    )(feat, ind_p, mask_p, tgt)
    return [o[0, 0] for o in outs]


# ---------------------------------------------------------------------------
# CtdetLoss forward
# ---------------------------------------------------------------------------
def ctdet_loss(pred, target, loss_weight):
    hm_w = loss_weight['hm_weight']
    wh_w = loss_weight['wh_weight']
    reg_w = loss_weight['reg_weight']
    ang_w = loss_weight['ang_weight']

    total = hm_w * focal_loss(pred['hm'], target['hm'])

    heads = []  # (key, apply_relu, weight)
    if ang_w > 0:
        heads.append(('ang', True, ang_w))
    if wh_w > 0:
        heads.append(('wh', False, wh_w))
    if reg_w > 0:
        heads.append(('reg', False, reg_w))

    if heads:
        losses = fused_reg_l1_losses(
            [pred[k] for k, _, _ in heads],
            [target[k] for k, _, _ in heads],
            [r for _, r, _ in heads],
            target['reg_mask'], target['ind'])
        for (_, _, w), l in zip(heads, losses):
            total = total + w * l
    return total


# ---------------------------------------------------------------------------
# Pure-JAX reference (for verification only)
# ---------------------------------------------------------------------------
def _ref_neg_loss(pred, gt):
    pos = (gt == 1.0).astype(jnp.float32)
    neg = (gt < 1.0).astype(jnp.float32)
    neg_w = (1.0 - gt) ** 4
    pos_l = (jnp.log(pred) * (1.0 - pred) ** 2 * pos).sum()
    neg_l = (jnp.log(1.0 - pred) * pred ** 2 * neg_w * neg).sum()
    num_pos = pos.sum()
    return jnp.where(num_pos == 0.0, -neg_l,
                     -(pos_l + neg_l) / jnp.maximum(num_pos, 1.0))


def _ref_regl1(pred, mask, ind, target, apply_relu=False):
    B, C, H, W = pred.shape
    feat = jnp.transpose(pred, (0, 2, 3, 1)).reshape(B, H * W, C)
    if apply_relu:
        feat = jnp.clip(jnp.maximum(feat, 0.0), 0.0, 179.99)
    gathered = feat[jnp.arange(B)[:, None], ind.astype(jnp.int32)]   # (B, K, C)
    m = mask.astype(jnp.float32)[:, :, None]
    l1 = jnp.abs(gathered * m - target * m).sum()
    return l1 / (m.sum() * C + 1e-4)


def ref_ctdet_loss(pred, target, lw):
    p = jnp.clip(jax.nn.sigmoid(pred['hm']), 1e-4, 1.0 - 1e-4)
    hm = _ref_neg_loss(p, target['hm'])
    ang = _ref_regl1(pred['ang'], target['reg_mask'], target['ind'],
                     target['ang'], apply_relu=True)
    wh = _ref_regl1(pred['wh'], target['reg_mask'], target['ind'], target['wh'])
    off = _ref_regl1(pred['reg'], target['reg_mask'], target['ind'], target['reg'])
    return (lw['hm_weight'] * hm + lw['wh_weight'] * wh
            + lw['reg_weight'] * off + lw['ang_weight'] * ang)


if __name__ == "__main__":
    key = jax.random.PRNGKey(0)
    B, NC, H, W, K = 2, 4, 16, 16, 8
    ks = jax.random.split(key, 10)

    pred = {
        'hm': jax.random.normal(ks[0], (B, NC, H, W), jnp.float32),
        'wh': jax.random.normal(ks[1], (B, 2, H, W), jnp.float32) * 3.0,
        'reg': jax.random.normal(ks[2], (B, 2, H, W), jnp.float32),
        'ang': jax.random.normal(ks[3], (B, 1, H, W), jnp.float32) * 50.0,
    }

    hm_t = jax.random.uniform(ks[4], (B, NC, H, W), jnp.float32, 0.0, 0.9)
    hm_t = (hm_t.at[0, 1, 3, 5].set(1.0)
                .at[1, 2, 7, 9].set(1.0)
                .at[0, 0, 10, 12].set(1.0))
    target = {
        'hm': hm_t,
        'ind': jax.random.randint(ks[5], (B, K), 0, H * W, jnp.int32),
        'reg_mask': (jax.random.uniform(ks[6], (B, K)) > 0.3).astype(jnp.float32),
        'wh': jax.random.uniform(ks[7], (B, K, 2), jnp.float32, 0.0, 10.0),
        'reg': jax.random.uniform(ks[8], (B, K, 2), jnp.float32, 0.0, 1.0),
        'ang': jax.random.uniform(ks[9], (B, K, 1), jnp.float32, 0.0, 180.0),
    }

    loss_weight = {'hm_weight': 1.0, 'wh_weight': 0.1,
                   'reg_weight': 1.0, 'ang_weight': 0.5}

    out = ctdet_loss(pred, target, loss_weight)
    out = jax.block_until_ready(out)

    ref = ref_ctdet_loss(pred, target, loss_weight)
    assert jnp.allclose(out, ref, rtol=1e-3, atol=1e-3), (out, ref)

    print("KERNEL_OK")
</pallas_src>

<mosaic_0001>
module attributes {stable_mosaic.version = 11 : i64} {
  func.func @_focal_kernel(%arg0: i32, %arg1: memref<16x128xf32, #tpu.memory_space<vmem>>, %arg2: memref<16x128xf32, #tpu.memory_space<vmem>>, %arg3: memref<8x128xf32, #tpu.memory_space<vmem>>, %arg4: memref<8x128xf32, #tpu.memory_space<vmem>>) attributes {dimension_semantics = [#tpu.dimension_semantics<parallel>], iteration_bounds = array<i64: 1>, scalar_prefetch = 0 : i64, scratch_operands = 0 : i64, tpu.core_type = #tpu.core_type<tc>, window_params = [{transform_indices = @transform_0, window_bounds = array<i64: 16, 128>}, {transform_indices = @transform_1, window_bounds = array<i64: 16, 128>}, {transform_indices = @transform_2, window_bounds = array<i64: 8, 128>}, {transform_indices = @transform_3, window_bounds = array<i64: 8, 128>}]} {
    %c0 = arith.constant 0 : index
    %c0_0 = arith.constant 0 : index
    %0 = vector.load %arg1[%c0, %c0_0] : memref<16x128xf32, #tpu.memory_space<vmem>>, vector<16x128xf32>
    %1 = arith.negf %0 : vector<16x128xf32>
    %2 = math.exp %1 : vector<16x128xf32>
    %cst = arith.constant 1.000000e+00 : f32
    %3 = vector.broadcast %cst : f32 to vector<16x128xf32>
    %4 = arith.addf %3, %2 : vector<16x128xf32>
    %5 = arith.divf %3, %4 : vector<16x128xf32>
    %cst_1 = arith.constant 9.99999974E-5 : f32
    %cst_2 = arith.constant 0.999899983 : f32
    %6 = vector.broadcast %cst_1 : f32 to vector<16x128xf32>
    %7 = arith.maximumf %6, %5 : vector<16x128xf32>
    %8 = vector.broadcast %cst_2 : f32 to vector<16x128xf32>
    %9 = arith.minimumf %8, %7 : vector<16x128xf32>
    %c0_3 = arith.constant 0 : index
    %c0_4 = arith.constant 0 : index
    %10 = vector.load %arg2[%c0_3, %c0_4] : memref<16x128xf32, #tpu.memory_space<vmem>>, vector<16x128xf32>
    %11 = tpu.iota {dimensions = array<i32: 0>} : vector<16x128xi32>
    %12 = tpu.iota {dimensions = array<i32: 1>} : vector<16x128xi32>
    %c16_i32 = arith.constant 16 : i32
    %13 = arith.muli %arg0, %c16_i32 : i32
    %14 = vector.broadcast %13 : i32 to vector<16x128xi32>
    %15 = arith.addi %14, %11 : vector<16x128xi32>
    %c128_i32 = arith.constant 128 : i32
    %16 = vector.broadcast %c128_i32 : i32 to vector<16x128xi32>
    %17 = arith.muli %15, %16 : vector<16x128xi32>
    %18 = arith.addi %17, %12 : vector<16x128xi32>
    %c2048_i32 = arith.constant 2048 : i32
    %19 = vector.broadcast %c2048_i32 : i32 to vector<16x128xi32>
    %20 = arith.cmpi slt, %18, %19 : vector<16x128xi32>
    %21 = arith.extui %20 : vector<16x128xi1> to vector<16x128xi32>
    %22 = arith.sitofp %21 : vector<16x128xi32> to vector<16x128xf32>
    %cst_5 = arith.constant 1.000000e+00 : f32
    %23 = vector.broadcast %cst_5 : f32 to vector<16x128xf32>
    %24 = arith.cmpf oeq, %10, %23 : vector<16x128xf32>
    %cst_6 = arith.constant 1.000000e+00 : f32
    %cst_7 = arith.constant 0.000000e+00 : f32
    %25 = vector.broadcast %cst_6 : f32 to vector<16x128xf32>
    %26 = vector.broadcast %cst_7 : f32 to vector<16x128xf32>
    %27 = arith.select %24, %25, %26 : vector<16x128xi1>, vector<16x128xf32>
    %28 = arith.mulf %27, %22 : vector<16x128xf32>
    %cst_8 = arith.constant 1.000000e+00 : f32
    %29 = vector.broadcast %cst_8 : f32 to vector<16x128xf32>
    %30 = arith.cmpf olt, %10, %29 : vector<16x128xf32>
    %cst_9 = arith.constant 1.000000e+00 : f32
    %cst_10 = arith.constant 0.000000e+00 : f32
    %31 = vector.broadcast %cst_9 : f32 to vector<16x128xf32>
    %32 = vector.broadcast %cst_10 : f32 to vector<16x128xf32>
    %33 = arith.select %30, %31, %32 : vector<16x128xi1>, vector<16x128xf32>
    %34 = arith.mulf %33, %22 : vector<16x128xf32>
    %cst_11 = arith.constant 1.000000e+00 : f32
    %35 = vector.broadcast %cst_11 : f32 to vector<16x128xf32>
    %36 = arith.subf %35, %10 : vector<16x128xf32>
    %37 = arith.mulf %36, %36 : vector<16x128xf32>
    %38 = arith.mulf %37, %37 : vector<16x128xf32>
    %39 = math.log %9 : vector<16x128xf32>
    %cst_12 = arith.constant 1.000000e+00 : f32
    %40 = vector.broadcast %cst_12 : f32 to vector<16x128xf32>
    %41 = arith.subf %40, %9 : vector<16x128xf32>
    %42 = arith.mulf %41, %41 : vector<16x128xf32>
    %43 = arith.mulf %39, %42 : vector<16x128xf32>
    %44 = arith.mulf %43, %28 : vector<16x128xf32>
    %cst_13 = arith.constant 1.000000e+00 : f32
    %45 = vector.broadcast %cst_13 : f32 to vector<16x128xf32>
    %46 = arith.subf %45, %9 : vector<16x128xf32>
    %47 = math.log %46 : vector<16x128xf32>
    %48 = arith.mulf %9, %9 : vector<16x128xf32>
    %49 = arith.mulf %47, %48 : vector<16x128xf32>
    %50 = arith.mulf %49, %38 : vector<16x128xf32>
    %51 = arith.mulf %50, %34 : vector<16x128xf32>
    %52 = arith.addf %44, %51 : vector<16x128xf32>
    %53 = vector.shape_cast %52 : vector<16x128xf32> to vector<2x8x128xf32>
    %cst_14 = arith.constant dense<0.000000e+00> : vector<8x128xf32>
    %54 = vector.multi_reduction <add>, %53, %cst_14 [0] : vector<2x8x128xf32> to vector<8x128xf32>
    %c0_15 = arith.constant 0 : index
    %c0_16 = arith.constant 0 : index
    %55 = vector.load %arg3[%c0_15, %c0_16] : memref<8x128xf32, #tpu.memory_space<vmem>>, vector<8x128xf32>
    tpu.vector_store %arg3[%c0_15, %c0_16], %54 {strides = array<i32>} : memref<8x128xf32, #tpu.memory_space<vmem>>, vector<8x128xf32>,
    %56 = vector.shape_cast %28 : vector<16x128xf32> to vector<2x8x128xf32>
    %cst_17 = arith.constant dense<0.000000e+00> : vector<8x128xf32>
    %57 = vector.multi_reduction <add>, %56, %cst_17 [0] : vector<2x8x128xf32> to vector<8x128xf32>
    %c0_18 = arith.constant 0 : index
    %c0_19 = arith.constant 0 : index
    %58 = vector.load %arg4[%c0_18, %c0_19] : memref<8x128xf32, #tpu.memory_space<vmem>>, vector<8x128xf32>
    tpu.vector_store %arg4[%c0_18, %c0_19], %57 {strides = array<i32>} : memref<8x128xf32, #tpu.memory_space<vmem>>, vector<8x128xf32>,
    return
  }
  func.func @transform_0(%arg0: i32) -> (i32, i32) {
    %c0_i32 = arith.constant 0 : i32
    %c0_i32_0 = arith.constant 0 : i32
    return %arg0, %c0_i32 : i32, i32
  }
  func.func @transform_1(%arg0: i32) -> (i32, i32) {
    %c0_i32 = arith.constant 0 : i32
    %c0_i32_0 = arith.constant 0 : i32
    return %arg0, %c0_i32 : i32, i32
  }
  func.func @transform_2(%arg0: i32) -> (i32, i32) {
    %c0_i32 = arith.constant 0 : i32
    %c0_i32_0 = arith.constant 0 : i32
    return %arg0, %c0_i32 : i32, i32
  }
  func.func @transform_3(%arg0: i32) -> (i32, i32) {
    %c0_i32 = arith.constant 0 : i32
    %c0_i32_0 = arith.constant 0 : i32
    return %arg0, %c0_i32 : i32, i32
  }
}

</mosaic_0001>

<bundles_post_ra>
// kernel: tpu_custom_call.1
= control target key start
LH: loop header
LB: loop body
LE: loop exit
PB: predicated region body
PF: predicated region fallthrough
CT: control target
= control target key end

     0   :  { %9 = vsyncpa [#allocation3], 0  ;;  %s390_s0 = inlined_call_operand.hbm [shape: f32[16,128], index: 0, kind: input, shape index: {}]   ;;  %s391_s1 = inlined_call_operand.hbm [shape: f32[16,128], index: 1, kind: input, shape index: {}]   ;;  %s392_s2 = inlined_call_operand.hbm [shape: f32[8,128], index: 2, kind: output, shape index: {0}]   ;;  %s393_s3 = inlined_call_operand.hbm [shape: f32[8,128], index: 3, kind: output, shape index: {1}]  }
   0x1   :  { %10 = vsyncpa [#allocation6], 0 }
   0x2   :  { %11 = vsyncpa [#allocation4], 0 }
   0x3   :  { %12 = vsyncpa [#allocation9], 0  ;;  %s283_s12 = smov [#allocation2]   ;;  %s187_s16 = scalar_lea.hbm %s390_s0, 256 }
   0x4   :  { %s18_s13 = sshll.u32 %s283_s12, 4  ;;  %p188_p0 = scmp.ne.s32.totalorder %s390_s0, %s187_s16  ;;  %s19_s13 = int_to_ptr.vmem [resolvable:$true] %s18_s13 }
   0x5   :  { %p191_p1 = scmp.lt.u32.totalorder %s187_s16, %s390_s0 }
   0x7   :  { %p193_p2 = pnand %p191_p1, %p188_p0 }
   0x9   :  { %196 = shalt.err (!%p193_p2)
}
   0xa   :  { %s197_s21 = scalar_lea.vmem %s19_s13, 256  ;;  %p202_p4 = scmp.lt.s32.totalorder %s19_s13, %s19_s13 }
   0xb   :  { %p198_p3 = scmp.ne.s32.totalorder %s19_s13, %s197_s21  ;;  %p203_p5 = scmp.lt.s32.totalorder %s197_s21, %s197_s21 }
   0xd   :  { %p204_p6 = por %p203_p5, %p202_p4 }
   0xf   :  { %p205_p7 = pnand %p204_p6, %p198_p3 }
  0x11   :  { %208 = shalt.err (!%p205_p7)
}
  0x12   :  { %s284_s22 = smov 128   ;;  %s285_s23 = smov 8  }
  0x13   :  { %24 = dma.hbm_to_vmem [thread:$0]  %s390_s0, 256, %s19_s13, [#allocation3], %s284_s22, %s284_s22, %s285_s23  }
  0x14   :  { %s286_s26 = smov [#allocation5]   ;;  %s209_s30 = scalar_lea.hbm %s391_s1, 256 }
  0x15   :  { %s30_s27 = sshll.u32 %s286_s26, 4  ;;  %p210_p8 = scmp.ne.s32.totalorder %s391_s1, %s209_s30  ;;  %s31_s27 = int_to_ptr.vmem [resolvable:$true] %s30_s27 }
  0x16   :  { %p213_p9 = scmp.lt.u32.totalorder %s209_s30, %s391_s1 }
  0x18   :  { %p215_p10 = pnand %p213_p9, %p210_p8 }
  0x1a   :  { %218 = shalt.err (!%p215_p10)
}
  0x1b   :  { %s219_s8 = scalar_lea.vmem %s31_s27, 256  ;;  %p224_p12 = scmp.lt.s32.totalorder %s31_s27, %s31_s27 }
  0x1c   :  { %p220_p11 = scmp.ne.s32.totalorder %s31_s27, %s219_s8  ;;  %p225_p13 = scmp.lt.s32.totalorder %s219_s8, %s219_s8 }
  0x1e   :  { %p226_p0 = por %p225_p13, %p224_p12 }
  0x20   :  { %p227_p1 = pnand %p226_p0, %p220_p11 }
  0x22   :  { %230 = shalt.err (!%p227_p1)
}
  0x23   :  { %36 = dma.hbm_to_vmem [thread:$0]  %s391_s1, 256, %s31_s27, [#allocation6], %s284_s22, %s284_s22, %s285_s23  }
  0x24   :  { %275 = dma.done.wait [#allocation3], 256  }
  0x25   :  { %276 = vsyncadd [#allocation3], 4294967040 }
  0x26   :  { %277 = dma.done.wait [#allocation6], 256  }
  0x27   :  { %278 = vsyncadd [#allocation6], 4294967040  ;;  %v63_v0 = vlaneseq  ;;  %v43_v7 = vld [vmem:[#allocation2] sm:$0xff]  ;;  %v44_v8 = vld [vmem:[#allocation2 + $0x8] sm:$0xff]  ;;  %v287_v14 = vmov 0.0   ;;  %s288_s1 = smov [#allocation8]  }
  0x28   :  { %v334_v9 = vld [vmem:[#allocation5] sm:$0xff]  ;;  %v160_v10 = vmul.f32 -1.442695, %v43_v7  ;;  %v161_v11 = vmul.f32 -1.442695, %v44_v8  ;;  %v336_v12 = vld [vmem:[#allocation5 + $0x8] sm:$0xff] }
  0x29   :  { %v64_v1 = vshrl.u32 %v63_v0, 7  ;;  %v67_v2 = vand.u32 127, %v63_v0  ;;  %vm82_vm1 = vcmp.eq.f32.partialorder %v334_v9, 1.0  ;;  %vm83_vm2 = vcmp.eq.f32.partialorder %v336_v12, 1.0  ;;  %s146_s10 = sshll.u32 %s288_s1, 4  ;;  %s147_s10 = int_to_ptr.vmem [resolvable:$true] %s146_s10 }
  0x2a   :  { %171 = vpow2.f32 %v160_v10  ;;  %v84_v16 = vsel %vm82_vm1, 1.0, %v287_v14  ;;  %v85_v17 = vsel %vm83_vm2, 1.0, %v287_v14  ;;  %s231_s11 = scalar_lea.vmem %s147_s10, 128  ;;  %p236_p3 = scmp.lt.s32.totalorder %s147_s10, %s147_s10 }
  0x2b   :  { %v65_v3 = vadd.s32 8, %v64_v1  ;;  %v72_v4 = vmul.u32 128, %v64_v1  ;;  %173 = vpow2.f32 %v161_v11  ;;  %p232_p2 = scmp.ne.s32.totalorder %s147_s10, %s231_s11  ;;  %p237_p4 = scmp.lt.s32.totalorder %s231_s11, %s231_s11 }
  0x2d   :  { %v73_v5 = vmul.u32 128, %v65_v3  ;;  %v74_v6 = vadd.s32 %v72_v4, %v67_v2  ;;  %p238_p5 = por %p237_p4, %p236_p3 }
  0x2f   :  { %v75_v13 = vadd.s32 %v73_v5, %v67_v2  ;;  %vm76_vm0 = vcmp.lt.s32.totalorder %v74_v6, 2048  ;;  %p239_p6 = pnand %p238_p5, %p232_p2 }
  0x30   :  { %v339_v15 = vsel %vm76_vm0, 1.0, %v287_v14 }
  0x31   :  { %vm77_vm3 = vcmp.lt.s32.totalorder %v75_v13, 2048  ;;  %v349_v19 = vmul.f32 %v339_v15, %v84_v16 }
  0x32   :  { %v346_v18 = vsel %vm77_vm3, 1.0, %v287_v14 }
  0x33   :  { %v352_v20 = vmul.f32 %v346_v18, %v85_v17 }
  0x35   :  { %v128_v21 = vadd.f32 %v352_v20, %v349_v19 }
  0x37   :  { %129 = vst [vmem:[#allocation8] sm:$0xff] %v128_v21 }
  0x38   :  { %242 = shalt.err (!%p239_p6)
}
  0x39   :  { %s243_s14 = scalar_lea.hbm %s393_s3, 128 }
  0x3a   :  { %p244_p7 = scmp.ne.s32.totalorder %s393_s3, %s243_s14  ;;  %p247_p8 = scmp.lt.u32.totalorder %s243_s14, %s393_s3 }
  0x3c   :  { %p249_p9 = pnand %p247_p8, %p244_p7 }
  0x3e   :  { %252 = shalt.err (!%p249_p9)
}
  0x3f   :  { %149 = dma.vmem_to_hbm [thread:$0]  %s147_s10, 128, %s393_s3, [#allocation9]   ;;  %v172_v22 = vpop.eup %171  ;;  %v94_v34 = vsub.f32 1.0, %v334_v9  ;;  %v95_v35 = vsub.f32 1.0, %v336_v12  ;;  %vm88_vm4 = vcmp.lt.f32.partialorder %v334_v9, 1.0  ;;  %vm89_vm5 = vcmp.lt.f32.partialorder %v336_v12, 1.0 }
  0x40   :  { %v174_v23 = vpop.eup %173  ;;  %v51_v24 = vadd.f32 1.0, %v172_v22  ;;  %v90_v45 = vsel %vm88_vm4, 1.0, %v287_v14  ;;  %v91_v49 = vsel %vm89_vm5, 1.0, %v287_v14  ;;  %s289_s3 = smov [#allocation7]  }
  0x41   :  { %v52_v25 = vadd.f32 1.0, %v174_v23  ;;  %v96_v36 = vmul.f32 %v94_v34, %v94_v34  ;;  %v97_v39 = vmul.f32 %v95_v35, %v95_v35  ;;  %v92_v56 = vmul.f32 %v339_v15, %v90_v45  ;;  %s136_s21 = sshll.u32 %s289_s3, 4  ;;  %s137_s21 = int_to_ptr.vmem [resolvable:$true] %s136_s21 }
  0x42   :  { %175 = vrcp.f32 %v51_v24  ;;  %v93_v58 = vmul.f32 %v346_v18, %v91_v49  ;;  %s253_s22 = scalar_lea.vmem %s137_s21, 128  ;;  %p258_p11 = scmp.lt.s32.totalorder %s137_s21, %s137_s21 }
  0x43   :  { %177 = vrcp.f32 %v52_v25  ;;  %v98_v50 = vmul.f32 %v96_v36, %v96_v36  ;;  %v99_v53 = vmul.f32 %v97_v39, %v97_v39  ;;  %p254_p10 = scmp.ne.s32.totalorder %s137_s21, %s253_s22  ;;  %p259_p12 = scmp.lt.s32.totalorder %s253_s22, %s253_s22 }
  0x45   :  { %p260_p13 = por %p259_p12, %p258_p11 }
  0x47   :  { %p261_p0 = pnand %p260_p13, %p254_p10 }
  0x4c   :  { %v176_v26 = vpop.eup %175 }
  0x4d   :  { %v178_v27 = vpop.eup %177  ;;  %v57_v28 = vmax.f32 %v176_v26, 0.0001 }
  0x4e   :  { %v58_v29 = vmax.f32 %v178_v27, 0.0001 }
  0x4f   :  { %v59_v30 = vmin.f32 %v57_v28, 0.9999 }
  0x50   :  { %v60_v31 = vmin.f32 %v58_v29, 0.9999 }
  0x51   :  { %179 = vlog2.f32 %v59_v30  ;;  %v104_v32 = vsub.f32 1.0, %v59_v30  ;;  %v116_v43 = vmul.f32 %v59_v30, %v59_v30 }
  0x52   :  { %181 = vlog2.f32 %v60_v31  ;;  %v105_v33 = vsub.f32 1.0, %v60_v31  ;;  %v117_v47 = vmul.f32 %v60_v31, %v60_v31 }
  0x53   :  { %183 = vlog2.f32 %v104_v32  ;;  %v106_v37 = vmul.f32 %v104_v32, %v104_v32 }
  0x54   :  { %185 = vlog2.f32 %v105_v33  ;;  %v107_v40 = vmul.f32 %v105_v33, %v105_v33 }
  0x5b   :  { %v180_v38 = vpop.eup %179 }
  0x5c   :  { %v182_v41 = vpop.eup %181  ;;  %v101_v42 = vmul.f32 0.6931472, %v180_v38 }
  0x5d   :  { %v184_v44 = vpop.eup %183  ;;  %v103_v46 = vmul.f32 0.6931472, %v182_v41 }
  0x5e   :  { %v186_v48 = vpop.eup %185  ;;  %v108_v51 = vmul.f32 %v106_v37, %v101_v42  ;;  %v113_v52 = vmul.f32 0.6931472, %v184_v44 }
  0x5f   :  { %v109_v54 = vmul.f32 %v107_v40, %v103_v46  ;;  %v115_v55 = vmul.f32 0.6931472, %v186_v48 }
  0x60   :  { %v118_v57 = vmul.f32 %v116_v43, %v113_v52  ;;  %v110_v60 = vmul.f32 %v108_v51, %v349_v19 }
  0x61   :  { %v119_v59 = vmul.f32 %v117_v47, %v115_v55  ;;  %v111_v62 = vmul.f32 %v109_v54, %v352_v20 }
  0x62   :  { %v120_v61 = vmul.f32 %v118_v57, %v98_v50 }
  0x63   :  { %v121_v63 = vmul.f32 %v119_v59, %v99_v53 }
  0x64   :  { %v122_v0 = vmul.f32 %v120_v61, %v92_v56 }
  0x65   :  { %v123_v1 = vmul.f32 %v121_v63, %v93_v58 }
  0x66   :  { %v124_v2 = vadd.f32 %v122_v0, %v110_v60 }
  0x67   :  { %v125_v3 = vadd.f32 %v123_v1, %v111_v62 }
  0x69   :  { %v126_v4 = vadd.f32 %v125_v3, %v124_v2 }
  0x6b   :  { %127 = vst [vmem:[#allocation7] sm:$0xff] %v126_v4 }
  0x6c   :  { %264 = shalt.err (!%p261_p0)
}
  0x6d   :  { %s265_s25 = scalar_lea.hbm %s392_s2, 128 }
  0x6e   :  { %p266_p1 = scmp.ne.s32.totalorder %s392_s2, %s265_s25  ;;  %p269_p2 = scmp.lt.u32.totalorder %s265_s25, %s392_s2 }
  0x70   :  { %p271_p3 = pnand %p269_p2, %p266_p1 }
  0x72   :  { %274 = shalt.err (!%p271_p3)
}
  0x73   :  { %139 = dma.vmem_to_hbm [thread:$0]  %s137_s21, 128, %s392_s2, [#allocation4]  }
  0x74   :  { %279 = dma.done.wait [#allocation4], 128  }
  0x75   :  { %280 = vsyncadd [#allocation4], 4294967168 }
  0x76   :  { %281 = dma.done.wait [#allocation9], 128  }
  0x77   :  { %282 = vsyncadd [#allocation9], 4294967168 }
  0x78   :  { %156 = vsyncpa [#allocation3], 1 }
  0x79   :  { %157 = vsyncpa [#allocation6], 1 }
  0x7a   :  { %158 = vsyncpa [#allocation4], 1 }
  0x7b   :  { %159 = vsyncpa [#allocation9], 1 }

</bundles_post_ra>
